<compile_context>
chip_gen: v6e
topology: v6e:2x2x1
jax: 0.10.0
libtpu: 0.0.40
codegen_flags: <defaults>
</compile_context>

<pallas_src>
import functools

import jax
import jax.numpy as jnp
from jax import lax
from jax.experimental import pallas as pl
from jax.experimental.pallas import tpu as pltpu


def _assignment_kernel(sta_idx_ref, phase_idx_ref,          # scalar prefetch (SMEM)
                       locs_ref, times_ref,                 # VMEM, resident blocks
                       sta_locs_ref, inv_vel_ref,           # SMEM tables
                       time_out_ref, idx_out_ref,           # VMEM outputs (1, N)
                       *, beta_space, beta_time, xr, yr, zr, tr, n_event):
    n = n_event
    b = pl.program_id(0)
    si = sta_idx_ref[b]
    pi = phase_idx_ref[b]
    sx = sta_locs_ref[si, 0]
    sy = sta_locs_ref[si, 1]
    sz = sta_locs_ref[si, 2]
    inv_vel = inv_vel_ref[pi]

    # --- loc_and_time (cheap: ~4N EUP transcendentals, recomputed per step) --
    s_locs = jax.nn.sigmoid(beta_space * locs_ref[...])                 # (3, N)
    xs = s_locs[0:1, :] * (xr[1] - xr[0]) + xr[0]                       # (1, N)
    ys = s_locs[1:2, :] * (yr[1] - yr[0]) + yr[0]
    zs = s_locs[2:3, :] * (zr[1] - zr[0]) + zr[0]
    ts = jax.nn.sigmoid(beta_time * times_ref[...]) * (tr[1] - tr[0]) + tr[0]

    # --- arrival_time --------------------------------------------------------
    dx = xs - sx
    dy = ys - sy
    dz = zs - sz
    dist = jnp.sqrt(dx * dx + dy * dy + dz * dz)                        # (1, N)
    time_row = dist * inv_vel + ts                                      # (1, N)

    # --- torch.sort: stable pairwise rank + MXU scatter-by-rank --------------
    t_col = jnp.transpose(time_row)                                     # (N, 1)
    j_row = lax.broadcasted_iota(jnp.int32, (1, n), 1)                  # (1, N)
    i_col = lax.broadcasted_iota(jnp.int32, (n, 1), 0)                  # (N, 1)
    # before[i, j] = 1 iff element j sorts strictly before element i (stable).
    before = jnp.logical_or(
        time_row < t_col,
        jnp.logical_and(time_row == t_col, j_row < i_col)
    ).astype(jnp.float32)                                               # (N, N)

    # rank[i] = sum_j before[i, j] on the MXU; result broadcast over columns.
    ones_nn = jnp.ones((n, n), jnp.float32)
    rank_bcast = jnp.dot(before, ones_nn,
                         preferred_element_type=jnp.float32)            # (N, N)

    j_f = j_row.astype(jnp.float32)                                     # (1, N)
    onehot = (rank_bcast == j_f).astype(jnp.float32)                    # [i, k]

    # payload rows: 0 -> time value, 1 -> original index; pad to 8 sublanes.
    payload = jnp.concatenate(
        [time_row, j_f, jnp.zeros((6, n), jnp.float32)], axis=0)        # (8, N)
    gathered = jnp.dot(payload, onehot,
                       preferred_element_type=jnp.float32,
                       precision=jax.lax.Precision.HIGHEST)             # (8, N)

    time_out_ref[...] = gathered[0:1, :]
    idx_out_ref[...] = gathered[1:2, :].astype(jnp.int32)


def assignment_forward_batched(event_locs_t, event_times_row, station_locs,
                               station_indices, phase_indices, config):
    """Batched Pallas forward: one pallas_call over all (station, phase) requests.

    event_locs_t:    (3, N) f32 parameter (events on the 128-lane axis).
    event_times_row: (1, N) f32 parameter.
    station_locs:    (n_station, 3) f32 station coordinate table.
    station_indices: (R,) int32 station index per request.
    phase_indices:   (R,) int32, 0 = 'P', 1 = 'S' per request.
    Returns (times, indices), each of shape (R, N).
    """
    n = event_locs_t.shape[1]
    n_req = int(station_indices.shape[0])
    inv_vel = jnp.array([1.0 / float(config['vel']['P']),
                         1.0 / float(config['vel']['S'])], jnp.float32)

    kernel = functools.partial(
        _assignment_kernel,
        beta_space=float(config['beta_space']),
        beta_time=float(config['beta_time']),
        xr=tuple(map(float, config['x(km)'])),
        yr=tuple(map(float, config['y(km)'])),
        zr=tuple(map(float, config['z(km)'])),
        tr=tuple(map(float, config['t(s)'])),
        n_event=n,
    )
    # TODO(synk): if n_event_max ever grows beyond ~1-2K, tile the O(N^2) sort
    # over row blocks (sized against the 64 MiB VMEM budget on v7x) and
    # accumulate the scatter matmul per block.

    grid_spec = pltpu.PrefetchScalarGridSpec(
        num_scalar_prefetch=2,                     # station_indices, phase_indices
        grid=(n_req,),
        in_specs=[
            pl.BlockSpec((3, n), lambda b, si, pi: (0, 0)),      # locs, resident
            pl.BlockSpec((1, n), lambda b, si, pi: (0, 0)),      # times, resident
            pl.BlockSpec(memory_space=pltpu.MemorySpace.SMEM),   # station table
            pl.BlockSpec(memory_space=pltpu.MemorySpace.SMEM),   # 1/vel per phase
        ],
        out_specs=(
            pl.BlockSpec((1, n), lambda b, si, pi: (b, 0)),
            pl.BlockSpec((1, n), lambda b, si, pi: (b, 0)),
        ),
    )

    times, idxs = pl.pallas_call(
        kernel,
        grid_spec=grid_spec,
        out_shape=(jax.ShapeDtypeStruct((n_req, n), jnp.float32),
                   jax.ShapeDtypeStruct((n_req, n), jnp.int32)),
        compiler_params=pltpu.CompilerParams(
            dimension_semantics=("parallel",)),    # shard requests across TCs (v7x)
    )(station_indices.astype(jnp.int32), phase_indices.astype(jnp.int32),
      event_locs_t, event_times_row, station_locs.astype(jnp.float32), inv_vel)
    return times, idxs


def assignment_forward(event_locs_t, event_times_row, station_locs,
                       station_index, config, phase='P'):
    """Single (station, phase) forward — matches AssignmentModel.forward."""
    phase_idx = 0 if phase == 'P' else 1
    times, idxs = assignment_forward_batched(
        event_locs_t, event_times_row, station_locs,
        jnp.array([station_index], jnp.int32),
        jnp.array([phase_idx], jnp.int32),
        config)
    return times[0], idxs[0]


def reference_forward(event_locs, event_times, station_locs, station_index,
                      config, phase='P'):
    """Plain-JAX reference matching the PyTorch module semantics."""
    locs = jax.nn.sigmoid(config['beta_space'] * event_locs)
    x0, x1 = config['x(km)']
    y0, y1 = config['y(km)']
    z0, z1 = config['z(km)']
    t0, t1 = config['t(s)']
    lx = locs[:, 0] * (x1 - x0) + x0
    ly = locs[:, 1] * (y1 - y0) + y0
    lz = locs[:, 2] * (z1 - z0) + z0
    locs = jnp.stack([lx, ly, lz], axis=1)
    times = jax.nn.sigmoid(config['beta_time'] * event_times) * (t1 - t0) + t0
    sta = station_locs[station_index]
    dist = jnp.sqrt(jnp.sum((locs - sta) ** 2, axis=1))
    time = dist / config['vel'][phase] + times
    order = jnp.argsort(time)
    return time[order], order, time


if __name__ == "__main__":
    config = {
        'n_event_max': 128,
        'P_phase': True,
        'S_phase': True,
        'vel': {'P': 6.0, 'S': 3.4},
        'x(km)': (0.0, 100.0),
        'y(km)': (0.0, 100.0),
        'z(km)': (0.0, 30.0),
        't(s)': (0.0, 100.0),
        'beta_time': 1.0,
        'beta_space': 1.0,
    }
    n_event = config['n_event_max']
    n_station = 8

    key = jax.random.PRNGKey(0)
    k_locs, k_sta = jax.random.split(key)

    # deterministic parameter init mirroring the module's __init__ shapes
    event_locs = jax.random.normal(k_locs, (n_event, 3), jnp.float32)     # ~ randn
    p = jnp.linspace(0.05, 0.95, n_event, dtype=jnp.float32)
    event_times = jnp.log(p / (1.0 - p))                                  # torch.logit
    station_locs = jax.random.uniform(k_sta, (n_station, 3), jnp.float32) \
        * jnp.array([100.0, 100.0, 30.0], jnp.float32)                    # station_df

    # Kernel-side parameter layout, converted ONCE (not per forward call):
    # events along the 128-lane axis.
    event_locs_t = jnp.asarray(event_locs, jnp.float32).T                 # (3, N)
    event_times_row = jnp.asarray(event_times, jnp.float32).reshape(1, n_event)

    # ---- single (station, phase) call: module-equivalent forward ------------
    station_index = 3
    phase = 'P'
    t_sorted, idx_sorted = assignment_forward(
        event_locs_t, event_times_row, station_locs, station_index, config, phase)
    jax.block_until_ready((t_sorted, idx_sorted))

    t_ref, idx_ref, t_unsorted = reference_forward(
        event_locs, event_times, station_locs, station_index, config, phase)

    assert t_sorted.shape == (n_event,) and idx_sorted.shape == (n_event,)
    assert jnp.allclose(t_sorted, t_ref, rtol=1e-4, atol=1e-4), "sorted times mismatch"
    assert jnp.allclose(t_unsorted[idx_sorted], t_sorted, rtol=1e-4, atol=1e-4), \
        "sort indices do not map unsorted -> sorted times"

    # ---- batched call: all stations x both phases in ONE pallas_call --------
    sta_idx = jnp.tile(jnp.arange(n_station, dtype=jnp.int32), 2)         # (16,)
    ph_idx = jnp.concatenate([jnp.zeros((n_station,), jnp.int32),
                              jnp.ones((n_station,), jnp.int32)])         # (16,)
    t_all, idx_all = assignment_forward_batched(
        event_locs_t, event_times_row, station_locs, sta_idx, ph_idx, config)
    jax.block_until_ready((t_all, idx_all))

    for r in (0, 5, n_station + 2, 2 * n_station - 1):
        ph = 'P' if int(ph_idx[r]) == 0 else 'S'
        tr_, _, tu_ = reference_forward(event_locs, event_times, station_locs,
                                        int(sta_idx[r]), config, ph)
        assert jnp.allclose(t_all[r], tr_, rtol=1e-4, atol=1e-4), \
            f"batched sorted times mismatch at request {r}"
        assert jnp.allclose(tu_[idx_all[r]], t_all[r], rtol=1e-4, atol=1e-4), \
            f"batched sort indices mismatch at request {r}"

    print("KERNEL_OK")
</pallas_src>

<mosaic_0001>
module attributes {stable_mosaic.version = 11 : i64} {
  func.func @_assignment_kernel(%arg0: i32, %arg1: memref<1xi32, #tpu.memory_space<smem>>, %arg2: memref<1xi32, #tpu.memory_space<smem>>, %arg3: memref<3x128xf32, #tpu.memory_space<vmem>>, %arg4: memref<1x128xf32, #tpu.memory_space<vmem>>, %arg5: memref<8x3xf32, #tpu.memory_space<smem>>, %arg6: memref<2xf32, #tpu.memory_space<smem>>, %arg7: memref<1x128xf32, #tpu.memory_space<vmem>>, %arg8: memref<1x128xi32, #tpu.memory_space<vmem>>) attributes {dimension_semantics = [#tpu.dimension_semantics<parallel>], iteration_bounds = array<i64: 1>, scalar_prefetch = 2 : i64, scratch_operands = 0 : i64, tpu.core_type = #tpu.core_type<tc>, window_params = [{pipeline_mode = #tpu.pipeline_mode<synchronous>, transform_indices = @transform_0, window_bounds = array<i64: 3, 128>}, {pipeline_mode = #tpu.pipeline_mode<synchronous>, transform_indices = @transform_1, window_bounds = array<i64: 1, 128>}, {transform_indices = @transform_2, window_bounds = array<i64: 8, 3>}, {transform_indices = @transform_3, window_bounds = array<i64: 2>}, {transform_indices = @transform_4, window_bounds = array<i64: 1, 128>}, {transform_indices = @transform_5, window_bounds = array<i64: 1, 128>}]} {
    %0 = arith.index_cast %arg0 : i32 to index
    %1 = memref.load %arg1[%0] : memref<1xi32, #tpu.memory_space<smem>>
    %2 = arith.index_cast %arg0 : i32 to index
    %3 = memref.load %arg2[%2] : memref<1xi32, #tpu.memory_space<smem>>
    %4 = arith.index_cast %1 : i32 to index
    %c0 = arith.constant 0 : index
    %5 = memref.load %arg5[%4, %c0] : memref<8x3xf32, #tpu.memory_space<smem>>
    %6 = arith.index_cast %1 : i32 to index
    %c1 = arith.constant 1 : index
    %7 = memref.load %arg5[%6, %c1] : memref<8x3xf32, #tpu.memory_space<smem>>
    %8 = arith.index_cast %1 : i32 to index
    %c2 = arith.constant 2 : index
    %9 = memref.load %arg5[%8, %c2] : memref<8x3xf32, #tpu.memory_space<smem>>
    %10 = arith.index_cast %3 : i32 to index
    %11 = memref.load %arg6[%10] : memref<2xf32, #tpu.memory_space<smem>>
    %c0_0 = arith.constant 0 : index
    %c0_1 = arith.constant 0 : index
    %12 = vector.load %arg3[%c0_0, %c0_1] : memref<3x128xf32, #tpu.memory_space<vmem>>, vector<3x128xf32>
    %cst = arith.constant 1.000000e+00 : f32
    %13 = vector.broadcast %cst : f32 to vector<3x128xf32>
    %14 = arith.mulf %13, %12 : vector<3x128xf32>
    %15 = arith.negf %14 : vector<3x128xf32>
    %16 = math.exp %15 : vector<3x128xf32>
    %cst_2 = arith.constant 1.000000e+00 : f32
    %17 = vector.broadcast %cst_2 : f32 to vector<3x128xf32>
    %18 = arith.addf %17, %16 : vector<3x128xf32>
    %19 = arith.divf %17, %18 : vector<3x128xf32>
    %20 = vector.extract_strided_slice %19 {offsets = [0, 0], sizes = [1, 128], strides = [1, 1]} : vector<3x128xf32> to vector<1x128xf32>
    %cst_3 = arith.constant 1.000000e+02 : f32
    %21 = vector.broadcast %cst_3 : f32 to vector<1x128xf32>
    %22 = arith.mulf %20, %21 : vector<1x128xf32>
    %cst_4 = arith.constant 0.000000e+00 : f32
    %23 = vector.broadcast %cst_4 : f32 to vector<1x128xf32>
    %24 = arith.addf %22, %23 : vector<1x128xf32>
    %25 = vector.extract_strided_slice %19 {offsets = [1, 0], sizes = [1, 128], strides = [1, 1]} : vector<3x128xf32> to vector<1x128xf32>
    %cst_5 = arith.constant 1.000000e+02 : f32
    %26 = vector.broadcast %cst_5 : f32 to vector<1x128xf32>
    %27 = arith.mulf %25, %26 : vector<1x128xf32>
    %cst_6 = arith.constant 0.000000e+00 : f32
    %28 = vector.broadcast %cst_6 : f32 to vector<1x128xf32>
    %29 = arith.addf %27, %28 : vector<1x128xf32>
    %30 = vector.extract_strided_slice %19 {offsets = [2, 0], sizes = [1, 128], strides = [1, 1]} : vector<3x128xf32> to vector<1x128xf32>
    %cst_7 = arith.constant 3.000000e+01 : f32
    %31 = vector.broadcast %cst_7 : f32 to vector<1x128xf32>
    %32 = arith.mulf %30, %31 : vector<1x128xf32>
    %cst_8 = arith.constant 0.000000e+00 : f32
    %33 = vector.broadcast %cst_8 : f32 to vector<1x128xf32>
    %34 = arith.addf %32, %33 : vector<1x128xf32>
    %c0_9 = arith.constant 0 : index
    %c0_10 = arith.constant 0 : index
    %35 = vector.load %arg4[%c0_9, %c0_10] : memref<1x128xf32, #tpu.memory_space<vmem>>, vector<1x128xf32>
    %cst_11 = arith.constant 1.000000e+00 : f32
    %36 = vector.broadcast %cst_11 : f32 to vector<1x128xf32>
    %37 = arith.mulf %36, %35 : vector<1x128xf32>
    %38 = arith.negf %37 : vector<1x128xf32>
    %39 = math.exp %38 : vector<1x128xf32>
    %cst_12 = arith.constant 1.000000e+00 : f32
    %40 = vector.broadcast %cst_12 : f32 to vector<1x128xf32>
    %41 = arith.addf %40, %39 : vector<1x128xf32>
    %42 = arith.divf %40, %41 : vector<1x128xf32>
    %cst_13 = arith.constant 1.000000e+02 : f32
    %43 = vector.broadcast %cst_13 : f32 to vector<1x128xf32>
    %44 = arith.mulf %42, %43 : vector<1x128xf32>
    %cst_14 = arith.constant 0.000000e+00 : f32
    %45 = vector.broadcast %cst_14 : f32 to vector<1x128xf32>
    %46 = arith.addf %44, %45 : vector<1x128xf32>
    %47 = vector.broadcast %5 : f32 to vector<1x128xf32>
    %48 = arith.subf %24, %47 : vector<1x128xf32>
    %49 = vector.broadcast %7 : f32 to vector<1x128xf32>
    %50 = arith.subf %29, %49 : vector<1x128xf32>
    %51 = vector.broadcast %9 : f32 to vector<1x128xf32>
    %52 = arith.subf %34, %51 : vector<1x128xf32>
    %53 = arith.mulf %48, %48 : vector<1x128xf32>
    %54 = arith.mulf %50, %50 : vector<1x128xf32>
    %55 = arith.addf %53, %54 : vector<1x128xf32>
    %56 = arith.mulf %52, %52 : vector<1x128xf32>
    %57 = arith.addf %55, %56 : vector<1x128xf32>
    %58 = math.sqrt %57 : vector<1x128xf32>
    %59 = vector.broadcast %11 : f32 to vector<1x128xf32>
    %60 = arith.mulf %58, %59 : vector<1x128xf32>
    %61 = arith.addf %60, %46 : vector<1x128xf32>
    %62 = tpu.transpose %61, [1, 0] : vector<1x128xf32> -> vector<128x1xf32>
    %63 = tpu.iota {dimensions = array<i32: 1>} : vector<1x128xi32>
    %64 = tpu.iota {dimensions = array<i32: 0>} : vector<128x1xi32>
    %65 = vector.broadcast %61 : vector<1x128xf32> to vector<128x128xf32>
    %66 = vector.broadcast %62 : vector<128x1xf32> to vector<128x128xf32>
    %67 = arith.cmpf olt, %65, %66 : vector<128x128xf32>
    %68 = vector.broadcast %61 : vector<1x128xf32> to vector<128x128xf32>
    %69 = vector.broadcast %62 : vector<128x1xf32> to vector<128x128xf32>
    %70 = arith.cmpf oeq, %68, %69 : vector<128x128xf32>
    %71 = vector.broadcast %63 : vector<1x128xi32> to vector<128x128xi32>
    %72 = vector.broadcast %64 : vector<128x1xi32> to vector<128x128xi32>
    %73 = arith.cmpi slt, %71, %72 : vector<128x128xi32>
    %74 = arith.andi %70, %73 : vector<128x128xi1>
    %75 = arith.ori %67, %74 : vector<128x128xi1>
    %76 = arith.extui %75 : vector<128x128xi1> to vector<128x128xi32>
    %77 = arith.sitofp %76 : vector<128x128xi32> to vector<128x128xf32>
    %cst_15 = arith.constant 1.000000e+00 : f32
    %78 = vector.broadcast %cst_15 : f32 to vector<128x128xf32>
    %cst_16 = arith.constant dense<0.000000e+00> : vector<128x128xf32>
    %79 = tpu.matmul %77, %78, %cst_16 {dimension_numbers = #tpu.dot_dimension_numbers<[1], [0], [0], [1], [0, 0, 1, 1], [], []>} : vector<128x128xf32>, vector<128x128xf32>, vector<128x128xf32> -> vector<128x128xf32>
    %80 = arith.sitofp %63 : vector<1x128xi32> to vector<1x128xf32>
    %81 = vector.broadcast %80 : vector<1x128xf32> to vector<128x128xf32>
    %82 = arith.cmpf oeq, %79, %81 : vector<128x128xf32>
    %83 = arith.extui %82 : vector<128x128xi1> to vector<128x128xi32>
    %84 = arith.sitofp %83 : vector<128x128xi32> to vector<128x128xf32>
    %cst_17 = arith.constant 0.000000e+00 : f32
    %85 = vector.broadcast %cst_17 : f32 to vector<6x128xf32>
    %86 = tpu.concatenate %61, %80, %85 in 0 : vector<1x128xf32>, vector<1x128xf32>, vector<6x128xf32> -> vector<8x128xf32>
    %cst_18 = arith.constant dense<0.000000e+00> : vector<8x128xf32>
    %87 = tpu.matmul %86, %84, %cst_18 {dimension_numbers = #tpu.dot_dimension_numbers<[1], [0], [0], [1], [0, 0, 1, 1], [], []>, precision = #tpu.contract_precision<fp32>} : vector<8x128xf32>, vector<128x128xf32>, vector<8x128xf32> -> vector<8x128xf32>
    %88 = vector.extract_strided_slice %87 {offsets = [0, 0], sizes = [1, 128], strides = [1, 1]} : vector<8x128xf32> to vector<1x128xf32>
    %c0_19 = arith.constant 0 : index
    %c0_20 = arith.constant 0 : index
    %89 = vector.load %arg7[%c0_19, %c0_20] : memref<1x128xf32, #tpu.memory_space<vmem>>, vector<1x128xf32>
    tpu.vector_store %arg7[%c0_19, %c0_20], %88 {strides = array<i32>} : memref<1x128xf32, #tpu.memory_space<vmem>>, vector<1x128xf32>,
    %90 = vector.extract_strided_slice %87 {offsets = [1, 0], sizes = [1, 128], strides = [1, 1]} : vector<8x128xf32> to vector<1x128xf32>
    %91 = arith.fptosi %90 : vector<1x128xf32> to vector<1x128xi32>
    %c0_21 = arith.constant 0 : index
    %c0_22 = arith.constant 0 : index
    %92 = vector.load %arg8[%c0_21, %c0_22] : memref<1x128xi32, #tpu.memory_space<vmem>>, vector<1x128xi32>
    tpu.vector_store %arg8[%c0_21, %c0_22], %91 {strides = array<i32>} : memref<1x128xi32, #tpu.memory_space<vmem>>, vector<1x128xi32>,
    return
  }
  func.func @transform_0(%arg0: i32, %arg1: memref<1xi32, #tpu.memory_space<smem>>, %arg2: memref<1xi32, #tpu.memory_space<smem>>) -> (i32, i32) {
    %c0_i32 = arith.constant 0 : i32
    %c0_i32_0 = arith.constant 0 : i32
    %c0_i32_1 = arith.constant 0 : i32
    return %c0_i32, %c0_i32_0 : i32, i32
  }
  func.func @transform_1(%arg0: i32, %arg1: memref<1xi32, #tpu.memory_space<smem>>, %arg2: memref<1xi32, #tpu.memory_space<smem>>) -> (i32, i32) {
    %c0_i32 = arith.constant 0 : i32
    %c0_i32_0 = arith.constant 0 : i32
    %c0_i32_1 = arith.constant 0 : i32
    return %c0_i32, %c0_i32_0 : i32, i32
  }
  func.func @transform_2(%arg0: i32, %arg1: memref<1xi32, #tpu.memory_space<smem>>, %arg2: memref<1xi32, #tpu.memory_space<smem>>) -> (i32, i32) {
    %c0_i32 = arith.constant 0 : i32
    %c0_i32_0 = arith.constant 0 : i32
    %c0_i32_1 = arith.constant 0 : i32
    return %c0_i32, %c0_i32_0 : i32, i32
  }
  func.func @transform_3(%arg0: i32, %arg1: memref<1xi32, #tpu.memory_space<smem>>, %arg2: memref<1xi32, #tpu.memory_space<smem>>) -> i32 {
    %c0_i32 = arith.constant 0 : i32
    %c0_i32_0 = arith.constant 0 : i32
    return %c0_i32 : i32
  }
  func.func @transform_4(%arg0: i32, %arg1: memref<1xi32, #tpu.memory_space<smem>>, %arg2: memref<1xi32, #tpu.memory_space<smem>>) -> (i32, i32) {
    %c0_i32 = arith.constant 0 : i32
    %c0_i32_0 = arith.constant 0 : i32
    return %arg0, %c0_i32 : i32, i32
  }
  func.func @transform_5(%arg0: i32, %arg1: memref<1xi32, #tpu.memory_space<smem>>, %arg2: memref<1xi32, #tpu.memory_space<smem>>) -> (i32, i32) {
    %c0_i32 = arith.constant 0 : i32
    %c0_i32_0 = arith.constant 0 : i32
    return %arg0, %c0_i32 : i32, i32
  }
}

</mosaic_0001>

<bundles_post_ra>
// kernel: tpu_custom_call.1
= control target key start
LH: loop header
LB: loop body
LE: loop exit
PB: predicated region body
PF: predicated region fallthrough
CT: control target
= control target key end

     0   :  { %15 = vsyncpa [#allocation7], 0  ;;  %s2607_s0 = inlined_call_operand.<no memory space> [shape: s32[1], index: 0, kind: input, shape index: {}]   ;;  %s2608_s1 = inlined_call_operand.<no memory space> [shape: s32[1], index: 1, kind: input, shape index: {}]   ;;  %s2609_s2 = inlined_call_operand.vmem [shape: f32[3,128], index: 2, kind: input, shape index: {}]   ;;  %s2610_s3 = inlined_call_operand.vmem [shape: f32[1,128], index: 3, kind: input, shape index: {}]   ;;  %s2611_s4 = inlined_call_operand.vmem [shape: f32[8,3], index: 4, kind: input, shape index: {}]   ;;  %s2612_s5 = inlined_call_operand.vmem [shape: f32[2], index: 5, kind: input, shape index: {}]   ;;  %s2613_s6 = inlined_call_operand.hbm [shape: f32[1,128], index: 6, kind: output, shape index: {0}]   ;;  %s2614_s7 = inlined_call_operand.hbm [shape: s32[1,128], index: 7, kind: output, shape index: {1}]  }
   0x1   :  { %16 = vsyncpa [#allocation9], 0 }
   0x2   :  { %17 = vsyncpa [#allocation6], 0 }
   0x3   :  { %18 = vsyncpa [#allocation12], 0  ;;  %s29_s26 = sshll.u32 %s2611_s4, 4  ;;  %s39_s29 = sshll.u32 %s2612_s5, 4  ;;  %s30_s26 = int_to_ptr.vmem [resolvable:$true] %s29_s26  ;;  %s40_s29 = int_to_ptr.vmem [resolvable:$true] %s39_s29 }
   0x4   :  { %s1746_s30 = scalar_lea.vmem %s30_s26, 128  ;;  %p1751_p1 = scmp.lt.s32.totalorder %s30_s26, %s30_s26 }
   0x5   :  { %p1747_p0 = scmp.ne.s32.totalorder %s30_s26, %s1746_s30  ;;  %p1752_p2 = scmp.lt.s32.totalorder %s1746_s30, %s1746_s30 }
   0x7   :  { %p1753_p3 = por %p1752_p2, %p1751_p1 }
   0x9   :  { %p1754_p4 = pnand %p1753_p3, %p1747_p0 }
   0xb   :  { %1757 = shalt.err (!%p1754_p4)
}
   0xc   :  { %s1818_s8 = smov [#allocation5]   ;;  %s1758_s9 = scalar_lea.vmem %s40_s29, 16 }
   0xd   :  { %32 = dma.vmem_to_smem %s30_s26, 128, %s1818_s8, [#allocation7]  }
   0xe   :  { %p1759_p5 = scmp.ne.s32.totalorder %s40_s29, %s1758_s9  ;;  %p1763_p6 = scmp.lt.s32.totalorder %s40_s29, %s40_s29 }
   0xf   :  { %p1764_p7 = scmp.lt.s32.totalorder %s1758_s9, %s1758_s9 }
  0x11   :  { %p1765_p8 = por %p1764_p7, %p1763_p6 }
  0x13   :  { %p1766_p9 = pnand %p1765_p8, %p1759_p5 }
  0x15   :  { %1769 = shalt.err (!%p1766_p9)
}
  0x16   :  { %s1819_s4 = smov [#allocation8]  }
  0x17   :  { %42 = dma.vmem_to_smem %s40_s29, 16, %s1819_s4, [#allocation9]  }
  0x18   :  { %1810 = dma.done.wait [#allocation7], 128  }
  0x19   :  { %1811 = vsyncadd [#allocation7], 4294967168 }
  0x1a   :  { %1812 = dma.done.wait [#allocation9], 16  }
  0x1b   :  { %1813 = vsyncadd [#allocation9], 4294967280 }
  0x1c   :  { %49 = sfence }
  0x1d   :  { %v59_v0 = vld [vmem:[%s2609_s2] sm:$0x7]  ;;  %v1820_v2 = vmov 0   ;;  %s1225_s13 = sshll.u32 %s2607_s0, 7  ;;  %s58_s20 = sld [smem:[#allocation8 + %s2608_s1]]  ;;  %v1821_v35 = vmov 1.0   ;;  %v138_v53 = vlaneseq }
  0x1e   :  { %v1226_v1 = vmul.f32 -1.442695, %v59_v0  ;;  %1735 = vset.pattern.permute.xlu1 %v1820_v2  ;;  %v70_v5 = vld [vmem:[%s2610_s3] sm:$0x1]  ;;  %s54_s16 = sadd.s32 1, %s1225_s13  ;;  %s56_s17 = sadd.s32 2, %s1225_s13  ;;  %1458 = vmatprep.subr.mxu0 %v1821_v35 }
  0x1f   :  { %v1227_v6 = vmul.f32 -1.442695, %v70_v5  ;;  %s53_s18 = sld [smem:[#allocation5 + %s1225_s13]]  ;;  %1459 = vmatpush3.msra.mxu0 %v1821_v35  ;;  %v1822_v52 = vmov 0.0   ;;  %v1921_v54 = vshrl.u32 %v138_v53, 7  ;;  %v1924_v56 = vand.u32 127, %v138_v53 }
  0x20   :  { %1736 = vpow2.f32 %v1226_v1  ;;  %s55_s2 = sld [smem:[#allocation5 + %s54_s16]]  ;;  %1460 = vmatprep.subr.mxu0 %v1821_v35  ;;  %1514 = vmatprep.subr.mxu1 %v1822_v52  ;;  %s1824_s1 = smov [#allocation10]  }
  0x21   :  { %s57_s19 = sld [smem:[#allocation5 + %s56_s17]]  ;;  %1461 = vmatpush3.msra.mxu0 %v1821_v35  ;;  %v159_v55 = vsub.s32 0, %v1921_v54  ;;  %v142_v58 = vadd.s32 8, %v1921_v54  ;;  %vm273_vm2 = vcmp.lt.s32.totalorder %v1924_v56, %v1921_v54  ;;  %v143_v60 = vadd.s32 16, %v1921_v54  ;;  %s1201_s21 = sshll.u32 %s1824_s1, 4  ;;  %s1202_s21 = int_to_ptr.vmem [resolvable:$true] %s1201_s21 }
  0x22   :  { %1462 = vmatprep.subr.mxu0 %v1821_v35  ;;  %v144_v62 = vadd.s32 24, %v1921_v54  ;;  %v145_v0 = vadd.s32 32, %v1921_v54  ;;  %s1825_s22 = smov [#allocation11]   ;;  %s1770_s24 = scalar_lea.vmem %s1202_s21, 16 }
  0x23   :  { %v103_v29 = vstv %s58_s20  ;;  %1463 = vmatpush3.msra.mxu0 %v1821_v35  ;;  %vm274_vm6 = vcmp.lt.s32.totalorder %v1924_v56, %v142_v58  ;;  %vm275_vm12 = vcmp.lt.s32.totalorder %v1924_v56, %v143_v60  ;;  %s1211_s23 = sshll.u32 %s1825_s22, 4  ;;  %p1771_p10 = scmp.ne.s32.totalorder %s1202_s21, %s1770_s24  ;;  %s1212_s23 = int_to_ptr.vmem [resolvable:$true] %s1211_s23 }
  0x24   :  { %1464 = vmatprep.subr.mxu0 %v1821_v35  ;;  %s1774_s25 = scalar_lea.vmem %s1202_s21, 32  ;;  %p1775_p11 = scmp.lt.s32.totalorder %s1202_s21, %s1202_s21 }
  0x25   :  { %v79_v8 = vstv %s53_s18  ;;  %1465 = vmatpush3.msra.mxu0 %v1821_v35  ;;  %p1776_p12 = scmp.lt.s32.totalorder %s1774_s25, %s1770_s24 }
  0x26   :  { %v81_v9 = vstv %s55_s2  ;;  %1466 = vmatprep.subr.mxu0 %v1821_v35 }
  0x27   :  { %v83_v10 = vstv %s57_s19  ;;  %1467 = vmatpush3.msra.mxu0 %v1821_v35  ;;  %p1777_p13 = por %p1776_p12, %p1775_p11 }
  0x28   :  { %1468 = vmatprep.subr.mxu0 %v1821_v35 }
  0x29   :  { %1469 = vmatpush3.msra.mxu0 %v1821_v35  ;;  %p1778_p0 = pnand %p1777_p13, %p1771_p10 }
  0x2a   :  { %1470 = vmatprep.subr.mxu0 %v1821_v35 }
  0x2b   :  { %1471 = vmatpush3.msra.mxu0 %v1821_v35 }
  0x2c   :  { %1472 = vmatprep.subr.mxu0 %v1821_v35 }
  0x2d   :  { %v1737_v3 = vpop.eup %1736  ;;  %1473 = vmatpush3.msra.mxu0 %v1821_v35 }
  0x2e   :  { %v63_v4 = vadd.f32 1.0, %v1737_v3  ;;  %1474 = vmatprep.subr.mxu0 %v1821_v35 }
  0x2f   :  { %1475 = vmatpush3.msra.mxu0 %v1821_v35 }
  0x30   :  { %1738 = vrcp.f32 %v63_v4  ;;  %1476 = vmatprep.subr.mxu0 %v1821_v35  ;;  %v147_v4 = vadd.s32 48, %v1921_v54 }
  0x31   :  { %1740 = vpow2.f32 %v1227_v6  ;;  %1477 = vmatpush3.msra.mxu0 %v1821_v35  ;;  %v148_v6 = vadd.s32 56, %v1921_v54 }
  0x32   :  { %1478 = vmatprep.subr.mxu0 %v1821_v35 }
  0x33   :  { %1479 = vmatpush3.msra.mxu0 %v1821_v35 }
  0x34   :  { %1480 = vmatprep.subr.mxu0 %v1821_v35 }
  0x35   :  { %1481 = vmatpush3.msra.mxu0 %v1821_v35 }
  0x36   :  { %1482 = vmatprep.subr.mxu0 %v1821_v35 }
  0x37   :  { %1483 = vmatpush3.msra.mxu0 %v1821_v35 }
  0x38   :  { %1484 = vmatprep.subr.mxu0 %v1821_v35 }
  0x39   :  { %1485 = vmatpush3.msra.mxu0 %v1821_v35 }
  0x3a   :  { %1486 = vmatprep.subr.mxu0 %v1821_v35 }
  0x3b   :  { %1487 = vmatpush3.msra.mxu0 %v1821_v35 }
  0x3c   :  { %1488 = vmatprep.subr.mxu0 %v1821_v35 }
  0x3d   :  { %v1739_v7 = vpop.eup %1738  ;;  %1489 = vmatpush3.msra.mxu0 %v1821_v35 }
  0x3e   :  { %v66_v11 = vmul.f32 100.0, %v1739_v7  ;;  %v68_v12 = vmul.f32 30.0, %v1739_v7  ;;  %v1741_v16 = vpop.eup %1740  ;;  %1549 = vmatprep.subr.mxu0 %v1822_v52 }
  0x3f   :  { %v74_v22 = vadd.f32 1.0, %v1741_v16  ;;  %v153_v16 = vadd.s32 96, %v1921_v54 }
  0x40   :  { %v80_v13 = vsub.f32 %v66_v11, %v79_v8  ;;  %v82_v14 = vsub.f32 %v66_v11, %v81_v9  ;;  %v84_v15 = vsub.f32 %v68_v12, %v83_v10  ;;  %v149_v8 = vadd.s32 64, %v1921_v54 }
  0x41   :  { %1742 = vrcp.f32 %v74_v22  ;;  %v150_v10 = vadd.s32 72, %v1921_v54  ;;  %v151_v12 = vadd.s32 80, %v1921_v54  ;;  %v156_v22 = vadd.s32 120, %v1921_v54 }
  0x42   :  { %v85_v17 = vmul.f32 %v80_v13, %v80_v13  ;;  %v86_v18 = vmul.f32 %v82_v14, %v82_v14  ;;  %v91_v19 = vmul.f32 %v84_v15, %v84_v15  ;;  %v152_v14 = vadd.s32 88, %v1921_v54 }
  0x44   :  { %v88_v20 = vrot.slane %v86_v18, 1  ;;  %v93_v21 = vrot.slane %v91_v19, 2  ;;  %v154_v18 = vadd.s32 104, %v1921_v54 }
  0x46   :  { %v90_v23 = vadd.f32 %v88_v20, %v85_v17  ;;  %v155_v20 = vadd.s32 112, %v1921_v54 }
  0x48   :  { %v95_v24 = vadd.f32 %v93_v21, %v90_v23 }
  0x4a   :  { %1744 = vrsqrt.f32 %v95_v24  ;;  %vm98_vm0 = vcmp.eq.f32.partialorder %v95_v24, inf  ;;  %v101_v27 = vand.u32 2147483648, %v95_v24  ;;  %vm100_vm1 = vcmp.eq.f32.partialorder %v95_v24, 0.0 }
  0x4e   :  { %v1743_v25 = vpop.eup %1742 }
  0x4f   :  { %v77_v30 = vmul.f32 100.0, %v1743_v25 }
  0x57   :  { %v1745_v26 = vpop.eup %1744 }
  0x58   :  { %v97_v28 = vmul.f32 %v1745_v26, %v95_v24 }
  0x5a   :  { %v99_v31 = vsel %vm98_vm0, %v95_v24, %v97_v28 }
  0x5b   :  { %v102_v32 = vsel %vm100_vm1, %v101_v27, %v99_v31  ;;  %vm276_vm1 = vcmp.lt.s32.totalorder %v1924_v56, %v144_v62 }
  0x5c   :  { %v104_v33 = vmul.f32 %v103_v29, %v102_v32 }
  0x5e   :  { %v1884_v34 = vadd.f32 %v104_v33, %v77_v30 }
  0x60   :  { %106 = vxpose.xlu0.b32.start.end [1/1] (short) %v1884_v34, 128  ;;  %v1927_v57 = vrot.slane %v1884_v34, %v159_v55 }
  0x89   :  { %1734 = vset.pattern.permute.xlu0 %v1820_v2  ;;  %v146_v2 = vadd.s32 40, %v1921_v54 }
  0xdc   :  { %v122_v36 = vpop.trf.xlu0 }
  0xdd   :  { %163 = vperm.xlu0 %1734, %v122_v36  }
  0xe0   :  { %v123_v37 = vpop.trf.xlu0 }
  0xe1   :  { %168 = vperm.xlu1 %1735, %v123_v37  }
  0xe4   :  { %v124_v38 = vpop.trf.xlu0 }
  0xe5   :  { %173 = vperm.xlu1 %1735, %v124_v38  }
  0xe8   :  { %v125_v39 = vpop.trf.xlu0 }
  0xe9   :  { %178 = vperm.xlu1 %1735, %v125_v39  }
  0xec   :  { %v126_v40 = vpop.trf.xlu0 }
  0xed   :  { %183 = vperm.xlu1 %1735, %v126_v40   ;;  %v2040_v40 = vcvt.s32.f32 %v1924_v56 }
  0xf0   :  { %v127_v41 = vpop.trf.xlu0 }
  0xf1   :  { %188 = vperm.xlu1 %1735, %v127_v41  }
  0xf4   :  { %v128_v42 = vpop.trf.xlu0 }
  0xf5   :  { %193 = vperm.xlu1 %1735, %v128_v42  }
  0xf8   :  { %v129_v43 = vpop.trf.xlu0 }
  0xf9   :  { %198 = vperm.xlu1 %1735, %v129_v43  }
  0xfc   :  { %v130_v44 = vpop.trf.xlu0 }
  0xfd   :  { %203 = vperm.xlu1 %1735, %v130_v44  }
 0x100   :  { %v131_v45 = vpop.trf.xlu0 }
 0x101   :  { %208 = vperm.xlu1 %1735, %v131_v45  }
 0x104   :  { %v132_v46 = vpop.trf.xlu0 }
 0x105   :  { %213 = vperm.xlu1 %1735, %v132_v46  }
 0x108   :  { %v133_v47 = vpop.trf.xlu0 }
 0x109   :  { %218 = vperm.xlu1 %1735, %v133_v47  }
 0x10c   :  { %v134_v48 = vpop.trf.xlu0 }
 0x10d   :  { %223 = vperm.xlu1 %1735, %v134_v48  }
 0x110   :  { %v135_v49 = vpop.trf.xlu0 }
 0x111   :  { %228 = vperm.xlu1 %1735, %v135_v49  }
 0x114   :  { %v136_v50 = vpop.trf.xlu0 }
 0x115   :  { %233 = vperm.xlu1 %1735, %v136_v50  }
 0x118   :  { %v137_v51 = vpop.trf.xlu0 }
 0x119   :  { %238 = vperm.xlu1 %1735, %v137_v51  }
 0x158   :  { %v164_v59 = vpop.permute.xlu0 %163 }
 0x159   :  { %vm241_vm3 = vcmp.lt.f32.partialorder %v1927_v57, %v164_v59  ;;  %vm257_vm4 = vcmp.eq.f32.partialorder %v1927_v57, %v164_v59 }
 0x15a   :  { %vm289_vm5 = vmand %vm257_vm4, %vm273_vm2 }
 0x15b   :  { %vm305_vm7 = vmor %vm241_vm3, %vm289_vm5 }
 0x15c   :  { %v169_v61 = vpop.permute.xlu1 %168  ;;  %1490 = vmatprep.mubr.msk.f32.mxu0 %vm305_vm7, %v1821_v35 }
 0x15d   :  { %vm242_vm8 = vcmp.lt.f32.partialorder %v1927_v57, %v169_v61  ;;  %vm258_vm9 = vcmp.eq.f32.partialorder %v1927_v57, %v169_v61 }
 0x15e   :  { %vm290_vm10 = vmand %vm258_vm9, %vm274_vm6  ;;  %vm277_vm6 = vcmp.lt.s32.totalorder %v1924_v56, %v145_v0 }
 0x15f   :  { %vm306_vm11 = vmor %vm242_vm8, %vm290_vm10 }
 0x160   :  { %v174_v63 = vpop.permute.xlu1 %173  ;;  %1491 = vmatmul.mubr.msk.f32.vlgmr.msra.gmra.mxu0 %vm306_vm11, %v1821_v35  ;;  %vm278_vm11 = vcmp.lt.s32.totalorder %v1924_v56, %v146_v2 }
 0x161   :  { %vm243_vm13 = vcmp.lt.f32.partialorder %v1927_v57, %v174_v63  ;;  %vm259_vm14 = vcmp.eq.f32.partialorder %v1927_v57, %v174_v63 }
 0x162   :  { %vm291_vm15 = vmand %vm259_vm14, %vm275_vm12 }
 0x163   :  { %vm307_vm0 = vmor %vm243_vm13, %vm291_vm15 }
 0x164   :  { %v179_v1 = vpop.permute.xlu1 %178  ;;  %1493 = vmatprep.mubr.msk.f32.mxu0 %vm307_vm0, %v1821_v35  ;;  %vm279_vm0 = vcmp.lt.s32.totalorder %v1924_v56, %v147_v4 }
 0x165   :  { %vm244_vm2 = vcmp.lt.f32.partialorder %v1927_v57, %v179_v1  ;;  %vm260_vm3 = vcmp.eq.f32.partialorder %v1927_v57, %v179_v1 }
 0x166   :  { %vm292_vm4 = vmand %vm260_vm3, %vm276_vm1 }
 0x167   :  { %vm308_vm5 = vmor %vm244_vm2, %vm292_vm4 }
 0x168   :  { %v184_v3 = vpop.permute.xlu1 %183  ;;  %1494 = vmatmul.mubr.msk.f32.gmra.mxu0 %vm308_vm5, %v1821_v35  ;;  %vm280_vm5 = vcmp.lt.s32.totalorder %v1924_v56, %v148_v6 }
 0x169   :  { %vm245_vm7 = vcmp.lt.f32.partialorder %v1927_v57, %v184_v3  ;;  %vm261_vm8 = vcmp.eq.f32.partialorder %v1927_v57, %v184_v3 }
 0x16a   :  { %vm293_vm9 = vmand %vm261_vm8, %vm277_vm6 }
 0x16b   :  { %vm309_vm10 = vmor %vm245_vm7, %vm293_vm9 }
 0x16c   :  { %v189_v5 = vpop.permute.xlu1 %188  ;;  %1496 = vmatprep.mubr.msk.f32.mxu0 %vm309_vm10, %v1821_v35  ;;  %vm281_vm10 = vcmp.lt.s32.totalorder %v1924_v56, %v149_v8 }
 0x16d   :  { %vm246_vm12 = vcmp.lt.f32.partialorder %v1927_v57, %v189_v5  ;;  %vm262_vm13 = vcmp.eq.f32.partialorder %v1927_v57, %v189_v5 }
 0x16e   :  { %vm294_vm14 = vmand %vm262_vm13, %vm278_vm11 }
 0x16f   :  { %vm310_vm15 = vmor %vm246_vm12, %vm294_vm14 }
 0x170   :  { %v194_v7 = vpop.permute.xlu1 %193  ;;  %1497 = vmatmul.mubr.msk.f32.gmra.mxu0 %vm310_vm15, %v1821_v35  ;;  %vm282_vm15 = vcmp.lt.s32.totalorder %v1924_v56, %v150_v10 }
 0x171   :  { %vm247_vm1 = vcmp.lt.f32.partialorder %v1927_v57, %v194_v7  ;;  %vm263_vm2 = vcmp.eq.f32.partialorder %v1927_v57, %v194_v7 }
 0x172   :  { %vm295_vm3 = vmand %vm263_vm2, %vm279_vm0 }
 0x173   :  { %vm311_vm4 = vmor %vm247_vm1, %vm295_vm3 }
 0x174   :  { %v199_v9 = vpop.permute.xlu1 %198  ;;  %1499 = vmatprep.mubr.msk.f32.mxu0 %vm311_vm4, %v1821_v35  ;;  %vm283_vm4 = vcmp.lt.s32.totalorder %v1924_v56, %v151_v12 }
 0x175   :  { %vm248_vm6 = vcmp.lt.f32.partialorder %v1927_v57, %v199_v9  ;;  %vm264_vm7 = vcmp.eq.f32.partialorder %v1927_v57, %v199_v9 }
 0x176   :  { %vm296_vm8 = vmand %vm264_vm7, %vm280_vm5 }
 0x177   :  { %vm312_vm9 = vmor %vm248_vm6, %vm296_vm8 }
 0x178   :  { %v204_v11 = vpop.permute.xlu1 %203  ;;  %1500 = vmatmul.mubr.msk.f32.gmra.mxu0 %vm312_vm9, %v1821_v35  ;;  %vm284_vm9 = vcmp.lt.s32.totalorder %v1924_v56, %v152_v14 }
 0x179   :  { %vm249_vm11 = vcmp.lt.f32.partialorder %v1927_v57, %v204_v11  ;;  %vm265_vm12 = vcmp.eq.f32.partialorder %v1927_v57, %v204_v11 }
 0x17a   :  { %vm297_vm13 = vmand %vm265_vm12, %vm281_vm10 }
 0x17b   :  { %vm313_vm14 = vmor %vm249_vm11, %vm297_vm13 }
 0x17c   :  { %v209_v13 = vpop.permute.xlu1 %208  ;;  %1502 = vmatprep.mubr.msk.f32.mxu0 %vm313_vm14, %v1821_v35  ;;  %vm285_vm14 = vcmp.lt.s32.totalorder %v1924_v56, %v153_v16 }
 0x17d   :  { %vm250_vm0 = vcmp.lt.f32.partialorder %v1927_v57, %v209_v13  ;;  %vm266_vm1 = vcmp.eq.f32.partialorder %v1927_v57, %v209_v13 }
 0x17e   :  { %vm298_vm2 = vmand %vm266_vm1, %vm282_vm15 }
 0x17f   :  { %vm314_vm3 = vmor %vm250_vm0, %vm298_vm2 }
 0x180   :  { %v214_v15 = vpop.permute.xlu1 %213  ;;  %1503 = vmatmul.mubr.msk.f32.gmra.mxu0 %vm314_vm3, %v1821_v35  ;;  %vm286_vm3 = vcmp.lt.s32.totalorder %v1924_v56, %v154_v18 }
 0x181   :  { %vm251_vm5 = vcmp.lt.f32.partialorder %v1927_v57, %v214_v15  ;;  %vm267_vm6 = vcmp.eq.f32.partialorder %v1927_v57, %v214_v15 }
 0x182   :  { %vm299_vm7 = vmand %vm267_vm6, %vm283_vm4 }
 0x183   :  { %vm315_vm8 = vmor %vm251_vm5, %vm299_vm7 }
 0x184   :  { %v219_v17 = vpop.permute.xlu1 %218  ;;  %1505 = vmatprep.mubr.msk.f32.mxu0 %vm315_vm8, %v1821_v35  ;;  %vm287_vm8 = vcmp.lt.s32.totalorder %v1924_v56, %v155_v20 }
 0x185   :  { %vm252_vm10 = vcmp.lt.f32.partialorder %v1927_v57, %v219_v17  ;;  %vm268_vm11 = vcmp.eq.f32.partialorder %v1927_v57, %v219_v17 }
 0x186   :  { %vm300_vm12 = vmand %vm268_vm11, %vm284_vm9 }
 0x187   :  { %vm316_vm13 = vmor %vm252_vm10, %vm300_vm12 }
 0x188   :  { %v224_v19 = vpop.permute.xlu1 %223  ;;  %1506 = vmatmul.mubr.msk.f32.gmra.mxu0 %vm316_vm13, %v1821_v35  ;;  %vm288_vm13 = vcmp.lt.s32.totalorder %v1924_v56, %v156_v22 }
 0x189   :  { %vm253_vm15 = vcmp.lt.f32.partialorder %v1927_v57, %v224_v19  ;;  %vm269_vm0 = vcmp.eq.f32.partialorder %v1927_v57, %v224_v19 }
 0x18a   :  { %vm301_vm1 = vmand %vm269_vm0, %vm285_vm14 }
 0x18b   :  { %vm317_vm2 = vmor %vm253_vm15, %vm301_vm1 }
 0x18c   :  { %v229_v21 = vpop.permute.xlu1 %228  ;;  %1508 = vmatprep.mubr.msk.f32.mxu0 %vm317_vm2, %v1821_v35  ;;  %vm2615_vm2 = vmmov 0  }
 0x18d   :  { %vm254_vm4 = vcmp.lt.f32.partialorder %v1927_v57, %v229_v21  ;;  %vm270_vm5 = vcmp.eq.f32.partialorder %v1927_v57, %v229_v21  ;;  %1546 = vmatprep.mubr.msk.f32.mxu1 %vm2615_vm2, %v1822_v52 }
 0x18e   :  { %vm302_vm6 = vmand %vm270_vm5, %vm286_vm3 }
 0x18f   :  { %vm318_vm7 = vmor %vm254_vm4, %vm302_vm6 }
 0x190   :  { %v234_v23 = vpop.permute.xlu1 %233  ;;  %1509 = vmatmul.mubr.msk.f32.gmra.mxu0 %vm318_vm7, %v1821_v35 }
 0x191   :  { %vm255_vm9 = vcmp.lt.f32.partialorder %v1927_v57, %v234_v23  ;;  %vm271_vm10 = vcmp.eq.f32.partialorder %v1927_v57, %v234_v23 }
 0x192   :  { %vm303_vm11 = vmand %vm271_vm10, %vm287_vm8 }
 0x193   :  { %vm319_vm12 = vmor %vm255_vm9, %vm303_vm11  ;;  %vm547_vm9 = vcmask 1040384  }
 0x194   :  { %v239_v24 = vpop.permute.xlu1 %238  ;;  %1511 = vmatprep.mubr.msk.f32.mxu0 %vm319_vm12, %v1821_v35  ;;  %vm549_vm12 = vcmask 1041408   ;;  %v548_v59 = vsel %vm547_vm9, %v1884_v34, %v2040_v40 }
 0x195   :  { %vm256_vm14 = vcmp.lt.f32.partialorder %v1927_v57, %v239_v24  ;;  %vm272_vm15 = vcmp.eq.f32.partialorder %v1927_v57, %v239_v24  ;;  %v550_v5 = vsel %vm549_vm12, %v548_v59, 0.0 }
 0x196   :  { %vm304_vm0 = vmand %vm272_vm15, %vm288_vm13  ;;  %v2187_v16 = vand.u32 4294901760, %v550_v5 }
 0x197   :  { %vm320_vm1 = vmor %vm256_vm14, %vm304_vm0 }
 0x198   :  { %1512 = vmatmul.mubr.msk.f32.gmra.mxu0 %vm320_vm1, %v1821_v35 }
 0x199   :  { %1581 = vmatprep.mubr.msk.f32.mxu0 %vm2615_vm2, %v1822_v52 }
 0x220   :  { %v2013_v25 = vpop.f32.mrf.mxu0 }
 0x221   :  { %vm500_vm12 = vcmp.eq.f32.partialorder %v2013_v25, %v2040_v40 }
 0x222   :  { %v2015_v26 = vpop.f32.mrf.mxu0 }
 0x223   :  { %vm499_vm2 = vcmp.eq.f32.partialorder %v2015_v26, %v2040_v40 }
 0x228   :  { %v2017_v27 = vpop.f32.mrf.mxu0 }
 0x229   :  { %vm502_vm1 = vcmp.eq.f32.partialorder %v2017_v27, %v2040_v40 }
 0x22a   :  { %v2019_v28 = vpop.f32.mrf.mxu0 }
 0x22b   :  { %vm501_vm9 = vcmp.eq.f32.partialorder %v2019_v28, %v2040_v40 }
 0x230   :  { %v2021_v29 = vpop.f32.mrf.mxu0 }
 0x231   :  { %vm504_vm15 = vcmp.eq.f32.partialorder %v2021_v29, %v2040_v40 }
 0x232   :  { %v2023_v30 = vpop.f32.mrf.mxu0  ;;  %v1265_v17 = vsel %vm504_vm15, 1.0, %v1822_v52 }
 0x233   :  { %vm503_vm0 = vcmp.eq.f32.partialorder %v2023_v30, %v2040_v40  ;;  %v2218_v23 = vsub.f32 %v1265_v17, %v1265_v17 }
 0x234   :  { %v1264_v22 = vsel %vm503_vm0, 1.0, %v1822_v52 }
 0x238   :  { %v2025_v31 = vpop.f32.mrf.mxu0 }
 0x239   :  { %vm2617_vm13 = vcmp.eq.f32.partialorder %v2025_v31, %v2040_v40 }
 0x23a   :  { %v2027_v32 = vpop.f32.mrf.mxu0  ;;  %v1267_v6 = vsel %vm2617_vm13, 1.0, %v1822_v52 }
 0x23b   :  { %vm505_vm14 = vcmp.eq.f32.partialorder %v2027_v32, %v2040_v40  ;;  %v2180_v12 = vsub.f32 %v1267_v6, %v1267_v6 }
 0x23c   :  { %v1266_v11 = vsel %vm505_vm14, 1.0, %v1822_v52 }
 0x23d   :  { %v2200_v18 = vsub.f32 %v1266_v11, %v1266_v11  ;;  %v701_v24 = vand.u32 4294901760, %v2180_v12 }
 0x240   :  { %v2029_v33 = vpop.f32.mrf.mxu0 }
 0x241   :  { %vm508_vm6 = vcmp.eq.f32.partialorder %v2029_v33, %v2040_v40 }
 0x242   :  { %v2031_v36 = vpop.f32.mrf.mxu0  ;;  %v1269_v51 = vsel %vm508_vm6, 1.0, %v1822_v52 }
 0x243   :  { %vm507_vm11 = vcmp.eq.f32.partialorder %v2031_v36, %v2040_v40  ;;  %v2133_v63 = vsub.f32 %v1269_v51, %v1269_v51  ;;  %v2239_v51 = vsub.f32 %v1264_v22, %v1264_v22 }
 0x244   :  { %v1268_v0 = vsel %vm507_vm11, 1.0, %v1822_v52 }
 0x245   :  { %v2162_v7 = vsub.f32 %v1268_v0, %v1268_v0  ;;  %v687_v13 = vand.u32 4294901760, %v2133_v63 }
 0x247   :  { %v694_v19 = vand.u32 4294901760, %v2162_v7 }
 0x248   :  { %v2033_v37 = vpop.f32.mrf.mxu0 }
 0x249   :  { %vm510_vm5 = vcmp.eq.f32.partialorder %v2033_v37, %v2040_v40  ;;  %v695_v59 = vsub.f32 %v2162_v7, %v694_v19 }
 0x24a   :  { %v2035_v38 = vpop.f32.mrf.mxu0  ;;  %v1271_v46 = vsel %vm510_vm5, 1.0, %v1822_v52 }
 0x24b   :  { %vm509_vm7 = vcmp.eq.f32.partialorder %v2035_v38, %v2040_v40  ;;  %v2107_v55 = vsub.f32 %v1271_v46, %v1271_v46  ;;  %v1263_v46 = vsel %vm502_vm1, 1.0, %v1822_v52  ;;  %v696_v11 = vand.u32 4294901760, %v695_v59 }
 0x24c   :  { %v1270_v53 = vsel %vm509_vm7, 1.0, %v1822_v52  ;;  %v2257_v0 = vsub.f32 %v1263_v46, %v1263_v46 }
 0x24d   :  { %v2123_v60 = vsub.f32 %v1270_v53, %v1270_v53  ;;  %v673_v1 = vand.u32 4294901760, %v2107_v55  ;;  %v708_v53 = vand.u32 4294901760, %v2200_v18 }
 0x24f   :  { %v680_v8 = vand.u32 4294901760, %v2123_v60  ;;  %v674_v15 = vsub.f32 %v2107_v55, %v673_v1 }
 0x250   :  { %v2037_v39 = vpop.f32.mrf.mxu0 }
 0x251   :  { %vm512_vm3 = vcmp.eq.f32.partialorder %v2037_v39, %v2040_v40  ;;  %v681_v21 = vsub.f32 %v2123_v60, %v680_v8 }
 0x252   :  { %v2042_v41 = vpop.f32.mrf.mxu0  ;;  %v1273_v42 = vsel %vm512_vm3, 1.0, %v1822_v52 }
 0x253   :  { %vm511_vm4 = vcmp.eq.f32.partialorder %v2042_v41, %v2040_v40  ;;  %v2064_v45 = vsub.f32 %v1273_v42, %v1273_v42  ;;  %v675_v42 = vand.u32 4294901760, %v674_v15  ;;  %v1260_v15 = vsel %vm499_vm2, 1.0, %v1822_v52 }
 0x254   :  { %v1272_v43 = vsel %vm511_vm4, 1.0, %v1822_v52 }
 0x255   :  { %v2082_v49 = vsub.f32 %v1272_v43, %v1272_v43  ;;  %v659_v56 = vand.u32 4294901760, %v2064_v45  ;;  %v688_v43 = vsub.f32 %v2133_v63, %v687_v13 }
 0x257   :  { %v666_v61 = vand.u32 4294901760, %v2082_v49  ;;  %v660_v4 = vsub.f32 %v2064_v45, %v659_v56 }
 0x258   :  { %v2058_v44 = vpop.f32.mrf.mxu0 }
 0x259   :  { %vm514_vm8 = vcmp.eq.f32.partialorder %v2058_v44, %v2040_v40  ;;  %v667_v10 = vsub.f32 %v2082_v49, %v666_v61  ;;  %v661_v14 = vand.u32 4294901760, %v660_v4  ;;  %v702_v4 = vsub.f32 %v2180_v12, %v701_v24 }
 0x25a   :  { %v1275_v47 = vsel %vm514_vm8, 1.0, %v1822_v52  ;;  %v2076_v48 = vpop.f32.mrf.mxu0  ;;  %1515 = vmatpush3.msk.msra.mxu1 %vm514_vm8, %v1821_v35 }
 0x25b   :  { %v2084_v50 = vsub.f32 %v1275_v47, %v1275_v47  ;;  %vm513_vm10 = vcmp.eq.f32.partialorder %v2076_v48, %v2040_v40  ;;  %1516 = vmatprep.subr.mxu1 %v1822_v52  ;;  %v668_v20 = vand.u32 4294901760, %v667_v10  ;;  %v2237_v47 = vsub.f32 %v550_v5, %v2187_v16 }
 0x25c   :  { %v1274_v54 = vsel %vm513_vm10, 1.0, %v1822_v52  ;;  %1517 = vmatpush3.msk.msra.mxu1 %vm513_vm10, %v1821_v35  ;;  %v1261_v5 = vsel %vm500_vm12, 1.0, %v1822_v52  ;;  %v722_v10 = vand.u32 4294901760, %v2239_v51 }
 0x25d   :  { %v645_v57 = vand.u32 4294901760, %v2084_v50  ;;  %v2111_v58 = vsub.f32 %v1274_v54, %v1274_v54  ;;  %1518 = vmatprep.subr.mxu1 %v1822_v52  ;;  %v682_v54 = vand.u32 4294901760, %v681_v21  ;;  %v634_v6 = vand.u32 4294901760, %v2237_v47 }
 0x25e   :  { %1519 = vmatpush3.msk.msra.mxu1 %vm512_vm3, %v1821_v35  ;;  %v2290_v17 = vsub.f32 %v1261_v5, %v1261_v5  ;;  %v703_v21 = vand.u32 4294901760, %v702_v4  ;;  %v723_v59 = vsub.f32 %v2239_v51, %v722_v10 }
 0x25f   :  { %v652_v62 = vand.u32 4294901760, %v2111_v58  ;;  %1520 = vmatprep.subr.mxu1 %v1822_v52  ;;  %v646_v34 = vsub.f32 %v2084_v50, %v645_v57 }
 0x260   :  { %1521 = vmatpush3.msk.msra.mxu1 %vm511_vm4, %v1821_v35 }
 0x261   :  { %1522 = vmatprep.subr.mxu1 %v1822_v52  ;;  %v647_v2 = vand.u32 4294901760, %v646_v34  ;;  %v653_v3 = vsub.f32 %v2111_v58, %v652_v62  ;;  %v1262_v34 = vsel %vm501_vm9, 1.0, %v1822_v52 }
 0x262   :  { %1523 = vmatpush3.msk.msra.mxu1 %vm510_vm5, %v1821_v35 }
 0x263   :  { %1524 = vmatprep.subr.mxu1 %v1822_v52  ;;  %1550 = vmatpush3.msra.mxu0 %v647_v2  ;;  %v654_v9 = vand.u32 4294901760, %v653_v3  ;;  %v715_v2 = vand.u32 4294901760, %v2218_v23  ;;  %v689_v3 = vand.u32 4294901760, %v688_v43  ;;  %v2305_v43 = vsub.f32 %v1260_v15, %v1260_v15 }
 0x264   :  { %1525 = vmatpush3.msk.msra.mxu1 %vm509_vm7, %v1821_v35  ;;  %1551 = vmatprep.subr.mxu0 %v1822_v52 }
 0x265   :  { %1526 = vmatprep.subr.mxu1 %v1822_v52  ;;  %1552 = vmatpush3.msra.mxu0 %v654_v9  ;;  %v2274_v9 = vsub.f32 %v1262_v34, %v1262_v34  ;;  %v716_v22 = vsub.f32 %v2218_v23, %v715_v2  ;;  %v743_v34 = vand.u32 4294901760, %v2290_v17 }
 0x266   :  { %1527 = vmatpush3.msk.msra.mxu1 %vm508_vm6, %v1821_v35  ;;  %1553 = vmatprep.subr.mxu0 %v1822_v52 }
 0x267   :  { %1528 = vmatprep.subr.mxu1 %v1822_v52  ;;  %1554 = vmatpush3.msra.mxu0 %v661_v14  ;;  %v709_v14 = vsub.f32 %v2200_v18, %v708_v53  ;;  %v736_v46 = vand.u32 4294901760, %v2274_v9 }
 0x268   :  { %1529 = vmatpush3.msk.msra.mxu1 %vm507_vm11, %v1821_v35  ;;  %1555 = vmatprep.subr.mxu0 %v1822_v52 }
 0x269   :  { %1530 = vmatprep.subr.mxu1 %v1822_v52  ;;  %1556 = vmatpush3.msra.mxu0 %v668_v20  ;;  %v729_v20 = vand.u32 4294901760, %v2257_v0  ;;  %v737_v15 = vsub.f32 %v2274_v9, %v736_v46 }
 0x26a   :  { %1531 = vmatpush3.msk.msra.mxu1 %vm2617_vm13, %v1821_v35  ;;  %1557 = vmatprep.subr.mxu0 %v1822_v52 }
 0x26b   :  { %1532 = vmatprep.subr.mxu1 %v1822_v52  ;;  %1558 = vmatpush3.msra.mxu0 %v675_v42  ;;  %v635_v42 = vsub.f32 %v2237_v47, %v634_v6  ;;  %v730_v4 = vsub.f32 %v2257_v0, %v729_v20 }
 0x26c   :  { %1533 = vmatpush3.msk.msra.mxu1 %vm505_vm14, %v1821_v35  ;;  %1559 = vmatprep.subr.mxu0 %v1822_v52 }
 0x26d   :  { %1534 = vmatprep.subr.mxu1 %v1822_v52  ;;  %1560 = vmatpush3.msra.mxu0 %v682_v54  ;;  %v710_v54 = vand.u32 4294901760, %v709_v14  ;;  %v636_v5 = vand.u32 4294901760, %v635_v42  ;;  %v724_v14 = vand.u32 4294901760, %v723_v59  ;;  %v738_v42 = vand.u32 4294901760, %v737_v15 }
 0x26e   :  { %1535 = vmatpush3.msk.msra.mxu1 %vm504_vm15, %v1821_v35  ;;  %1561 = vmatprep.subr.mxu0 %v1822_v52 }
 0x26f   :  { %1536 = vmatprep.subr.mxu1 %v1822_v52  ;;  %1562 = vmatpush3.msra.mxu0 %v689_v3  ;;  %v717_v3 = vand.u32 4294901760, %v716_v22  ;;  %v744_v22 = vsub.f32 %v2290_v17, %v743_v34 }
 0x270   :  { %1537 = vmatpush3.msk.msra.mxu1 %vm503_vm0, %v1821_v35  ;;  %1563 = vmatprep.subr.mxu0 %v1822_v52 }
 0x271   :  { %1538 = vmatprep.subr.mxu1 %v1822_v52  ;;  %1564 = vmatpush3.msra.mxu0 %v696_v11  ;;  %v750_v11 = vand.u32 4294901760, %v2305_v43  ;;  %v745_v59 = vand.u32 4294901760, %v744_v22 }
 0x272   :  { %1539 = vmatpush3.msk.msra.mxu1 %vm502_vm1, %v1821_v35  ;;  %1565 = vmatprep.subr.mxu0 %v1822_v52 }
 0x273   :  { %1540 = vmatprep.subr.mxu1 %v1822_v52  ;;  %1566 = vmatpush3.msra.mxu0 %v703_v21  ;;  %v731_v21 = vand.u32 4294901760, %v730_v4 }
 0x274   :  { %1541 = vmatpush3.msk.msra.mxu1 %vm501_vm9, %v1821_v35  ;;  %1567 = vmatprep.subr.mxu0 %v1822_v52 }
 0x275   :  { %1542 = vmatprep.subr.mxu1 %v1822_v52  ;;  %1568 = vmatpush3.msra.mxu0 %v710_v54  ;;  %v751_v54 = vsub.f32 %v2305_v43, %v750_v11 }
 0x276   :  { %1543 = vmatpush3.msk.msra.mxu1 %vm500_vm12, %v1821_v35  ;;  %1569 = vmatprep.subr.mxu0 %v1822_v52 }
 0x277   :  { %1544 = vmatprep.subr.mxu1 %v1822_v52  ;;  %1570 = vmatpush3.msra.mxu0 %v717_v3  ;;  %v752_v3 = vand.u32 4294901760, %v751_v54 }
 0x278   :  { %1545 = vmatpush3.msk.msra.mxu1 %vm499_vm2, %v1821_v35  ;;  %1571 = vmatprep.subr.mxu0 %v1822_v52 }
 0x279   :  { %1572 = vmatpush3.msra.mxu0 %v724_v14  ;;  %1584 = vmatprep.subr.mxu1 %v1822_v52 }
 0x27a   :  { %1547 = vmatmul.mubr.f32.vlgmr.msra.gmra.mxu1 %v636_v5  ;;  %1573 = vmatprep.subr.mxu0 %v1822_v52 }
 0x27b   :  { %1585 = vmatpush3.msra.mxu1 %v2084_v50  ;;  %1574 = vmatpush3.msra.mxu0 %v731_v21 }
 0x27c   :  { %1586 = vmatprep.subr.mxu1 %v1822_v52  ;;  %1575 = vmatprep.subr.mxu0 %v1822_v52 }
 0x27d   :  { %1587 = vmatpush3.msra.mxu1 %v2111_v58  ;;  %1576 = vmatpush3.msra.mxu0 %v738_v42 }
 0x27e   :  { %1588 = vmatprep.subr.mxu1 %v1822_v52  ;;  %1577 = vmatprep.subr.mxu0 %v1822_v52 }
 0x27f   :  { %1589 = vmatpush3.msra.mxu1 %v2064_v45  ;;  %1578 = vmatpush3.msra.mxu0 %v745_v59 }
 0x280   :  { %1590 = vmatprep.subr.mxu1 %v1822_v52  ;;  %1579 = vmatprep.subr.mxu0 %v1822_v52 }
 0x281   :  { %1591 = vmatpush3.msra.mxu1 %v2082_v49  ;;  %1580 = vmatpush3.msra.mxu0 %v752_v3 }
 0x282   :  { %1592 = vmatprep.subr.mxu1 %v1822_v52  ;;  %1582 = vmatmul.mubr.f32.vlgmr.msra.gmra.mxu0 %v2187_v16 }
 0x283   :  { %1593 = vmatpush3.msra.mxu1 %v2107_v55  ;;  %1619 = vmatprep.subr.mxu0 %v1822_v52 }
 0x284   :  { %1594 = vmatprep.subr.mxu1 %v1822_v52  ;;  %1620 = vmatpush3.msk.msra.mxu0 %vm514_vm8, %v1821_v35 }
 0x285   :  { %1595 = vmatpush3.msra.mxu1 %v2123_v60  ;;  %1621 = vmatprep.subr.mxu0 %v1822_v52 }
 0x286   :  { %1596 = vmatprep.subr.mxu1 %v1822_v52  ;;  %1622 = vmatpush3.msk.msra.mxu0 %vm513_vm10, %v1821_v35 }
 0x287   :  { %1597 = vmatpush3.msra.mxu1 %v2133_v63  ;;  %1623 = vmatprep.subr.mxu0 %v1822_v52 }
 0x288   :  { %1598 = vmatprep.subr.mxu1 %v1822_v52  ;;  %1624 = vmatpush3.msk.msra.mxu0 %vm512_vm3, %v1821_v35 }
 0x289   :  { %1599 = vmatpush3.msra.mxu1 %v2162_v7  ;;  %1625 = vmatprep.subr.mxu0 %v1822_v52 }
 0x28a   :  { %1600 = vmatprep.subr.mxu1 %v1822_v52  ;;  %1626 = vmatpush3.msk.msra.mxu0 %vm511_vm4, %v1821_v35 }
 0x28b   :  { %1601 = vmatpush3.msra.mxu1 %v2180_v12  ;;  %1627 = vmatprep.subr.mxu0 %v1822_v52 }
 0x28c   :  { %1602 = vmatprep.subr.mxu1 %v1822_v52  ;;  %1628 = vmatpush3.msk.msra.mxu0 %vm510_vm5, %v1821_v35 }
 0x28d   :  { %1603 = vmatpush3.msra.mxu1 %v2200_v18  ;;  %1629 = vmatprep.subr.mxu0 %v1822_v52 }
 0x28e   :  { %1604 = vmatprep.subr.mxu1 %v1822_v52  ;;  %1630 = vmatpush3.msk.msra.mxu0 %vm509_vm7, %v1821_v35 }
 0x28f   :  { %1605 = vmatpush3.msra.mxu1 %v2218_v23  ;;  %1631 = vmatprep.subr.mxu0 %v1822_v52 }
 0x290   :  { %1606 = vmatprep.subr.mxu1 %v1822_v52  ;;  %1632 = vmatpush3.msk.msra.mxu0 %vm508_vm6, %v1821_v35 }
 0x291   :  { %1607 = vmatpush3.msra.mxu1 %v2239_v51  ;;  %1633 = vmatprep.subr.mxu0 %v1822_v52 }
 0x292   :  { %1608 = vmatprep.subr.mxu1 %v1822_v52  ;;  %1634 = vmatpush3.msk.msra.mxu0 %vm507_vm11, %v1821_v35 }
 0x293   :  { %1609 = vmatpush3.msra.mxu1 %v2257_v0  ;;  %1635 = vmatprep.subr.mxu0 %v1822_v52 }
 0x294   :  { %1610 = vmatprep.subr.mxu1 %v1822_v52  ;;  %1636 = vmatpush3.msk.msra.mxu0 %vm2617_vm13, %v1821_v35  ;;  %vm2618_vm13 = vmmov 0  }
 0x295   :  { %1611 = vmatpush3.msra.mxu1 %v2274_v9  ;;  %1637 = vmatprep.subr.mxu0 %v1822_v52 }
 0x296   :  { %1612 = vmatprep.subr.mxu1 %v1822_v52  ;;  %1638 = vmatpush3.msk.msra.mxu0 %vm505_vm14, %v1821_v35 }
 0x297   :  { %1613 = vmatpush3.msra.mxu1 %v2290_v17  ;;  %1639 = vmatprep.subr.mxu0 %v1822_v52 }
 0x298   :  { %1614 = vmatprep.subr.mxu1 %v1822_v52  ;;  %1640 = vmatpush3.msk.msra.mxu0 %vm504_vm15, %v1821_v35 }
 0x299   :  { %1615 = vmatpush3.msra.mxu1 %v2305_v43  ;;  %1616 = vmatprep.mubr.msk.f32.mxu1 %vm2618_vm13, %v1822_v52 }
 0x29a   :  { %1641 = vmatprep.subr.mxu0 %v1822_v52  ;;  %1617 = vmatmul.mubr.f32.vlgmr.msra.gmra.mxu1 %v2237_v47 }
 0x29b   :  { %1642 = vmatpush3.msk.msra.mxu0 %vm503_vm0, %v1821_v35  ;;  %1654 = vmatprep.subr.mxu1 %v1822_v52 }
 0x29c   :  { %1643 = vmatprep.subr.mxu0 %v1822_v52  ;;  %1655 = vmatpush3.msra.mxu1 %v645_v57 }
 0x29d   :  { %1644 = vmatpush3.msk.msra.mxu0 %vm502_vm1, %v1821_v35  ;;  %1656 = vmatprep.subr.mxu1 %v1822_v52 }
 0x29e   :  { %1645 = vmatprep.subr.mxu0 %v1822_v52  ;;  %1657 = vmatpush3.msra.mxu1 %v652_v62 }
 0x29f   :  { %1646 = vmatpush3.msk.msra.mxu0 %vm501_vm9, %v1821_v35  ;;  %1658 = vmatprep.subr.mxu1 %v1822_v52 }
 0x2a0   :  { %1647 = vmatprep.subr.mxu0 %v1822_v52  ;;  %1659 = vmatpush3.msra.mxu1 %v659_v56 }
 0x2a1   :  { %1648 = vmatpush3.msk.msra.mxu0 %vm500_vm12, %v1821_v35  ;;  %1660 = vmatprep.subr.mxu1 %v1822_v52 }
 0x2a2   :  { %1649 = vmatprep.subr.mxu0 %v1822_v52  ;;  %1661 = vmatpush3.msra.mxu1 %v666_v61 }
 0x2a3   :  { %1650 = vmatpush3.msk.msra.mxu0 %vm499_vm2, %v1821_v35  ;;  %1651 = vmatprep.mubr.msk.f32.mxu0 %vm2618_vm13, %v1822_v52 }
 0x2a4   :  { %1662 = vmatprep.subr.mxu1 %v1822_v52  ;;  %1652 = vmatmul.mubr.f32.vlgmr.msra.gmra.mxu0 %v634_v6 }
 0x2a5   :  { %1663 = vmatpush3.msra.mxu1 %v673_v1  ;;  %1689 = vmatprep.subr.mxu0 %v1822_v52 }
 0x2a6   :  { %1664 = vmatprep.subr.mxu1 %v1822_v52  ;;  %1690 = vmatpush3.msk.msra.mxu0 %vm514_vm8, %v1821_v35 }
 0x2a7   :  { %1665 = vmatpush3.msra.mxu1 %v680_v8  ;;  %1691 = vmatprep.subr.mxu0 %v1822_v52 }
 0x2a8   :  { %1666 = vmatprep.subr.mxu1 %v1822_v52  ;;  %1692 = vmatpush3.msk.msra.mxu0 %vm513_vm10, %v1821_v35 }
 0x2a9   :  { %1667 = vmatpush3.msra.mxu1 %v687_v13  ;;  %1693 = vmatprep.subr.mxu0 %v1822_v52 }
 0x2aa   :  { %1668 = vmatprep.subr.mxu1 %v1822_v52  ;;  %1694 = vmatpush3.msk.msra.mxu0 %vm512_vm3, %v1821_v35  ;;  %vm2619_vm3 = vcmp.eq.f32.partialorder %v2025_v31, %v2040_v40 }
 0x2ab   :  { %1669 = vmatpush3.msra.mxu1 %v694_v19  ;;  %1695 = vmatprep.subr.mxu0 %v1822_v52 }
 0x2ac   :  { %1670 = vmatprep.subr.mxu1 %v1822_v52  ;;  %1696 = vmatpush3.msk.msra.mxu0 %vm511_vm4, %v1821_v35 }
 0x2ad   :  { %1671 = vmatpush3.msra.mxu1 %v701_v24  ;;  %1697 = vmatprep.subr.mxu0 %v1822_v52 }
 0x2ae   :  { %1672 = vmatprep.subr.mxu1 %v1822_v52  ;;  %1698 = vmatpush3.msk.msra.mxu0 %vm510_vm5, %v1821_v35 }
 0x2af   :  { %1673 = vmatpush3.msra.mxu1 %v708_v53  ;;  %1699 = vmatprep.subr.mxu0 %v1822_v52 }
 0x2b0   :  { %1674 = vmatprep.subr.mxu1 %v1822_v52  ;;  %1700 = vmatpush3.msk.msra.mxu0 %vm509_vm7, %v1821_v35 }
 0x2b1   :  { %1675 = vmatpush3.msra.mxu1 %v715_v2  ;;  %1701 = vmatprep.subr.mxu0 %v1822_v52 }
 0x2b2   :  { %1676 = vmatprep.subr.mxu1 %v1822_v52  ;;  %1702 = vmatpush3.msk.msra.mxu0 %vm508_vm6, %v1821_v35 }
 0x2b3   :  { %1677 = vmatpush3.msra.mxu1 %v722_v10  ;;  %1703 = vmatprep.subr.mxu0 %v1822_v52 }
 0x2b4   :  { %1678 = vmatprep.subr.mxu1 %v1822_v52  ;;  %1704 = vmatpush3.msk.msra.mxu0 %vm507_vm11, %v1821_v35 }
 0x2b5   :  { %1679 = vmatpush3.msra.mxu1 %v729_v20  ;;  %1705 = vmatprep.subr.mxu0 %v1822_v52 }
 0x2b6   :  { %1680 = vmatprep.subr.mxu1 %v1822_v52  ;;  %1706 = vmatpush3.msk.msra.mxu0 %vm2619_vm3, %v1821_v35 }
 0x2b7   :  { %1681 = vmatpush3.msra.mxu1 %v736_v46  ;;  %1707 = vmatprep.subr.mxu0 %v1822_v52 }
 0x2b8   :  { %1682 = vmatprep.subr.mxu1 %v1822_v52  ;;  %1708 = vmatpush3.msk.msra.mxu0 %vm505_vm14, %v1821_v35 }
 0x2b9   :  { %1683 = vmatpush3.msra.mxu1 %v743_v34  ;;  %1709 = vmatprep.subr.mxu0 %v1822_v52 }
 0x2ba   :  { %1684 = vmatprep.subr.mxu1 %v1822_v52  ;;  %1710 = vmatpush3.msk.msra.mxu0 %vm504_vm15, %v1821_v35 }
 0x2bb   :  { %1685 = vmatpush3.msra.mxu1 %v750_v11  ;;  %1686 = vmatprep.mubr.msk.f32.mxu1 %vm2618_vm13, %v1822_v52 }
 0x2bc   :  { %1711 = vmatprep.subr.mxu0 %v1822_v52  ;;  %1687 = vmatmul.mubr.f32.vlgmr.msra.gmra.mxu1 %v2187_v16 }
 0x2bd   :  { %1712 = vmatpush3.msk.msra.mxu0 %vm503_vm0, %v1821_v35  ;;  %1721 = vmatprep.mubr.msk.f32.mxu0 %vm2618_vm13, %v1822_v52 }
 0x2be   :  { %1713 = vmatprep.subr.mxu0 %v1822_v52 }
 0x2bf   :  { %1714 = vmatpush3.msk.msra.mxu0 %vm502_vm1, %v1821_v35 }
 0x2c0   :  { %1715 = vmatprep.subr.mxu0 %v1822_v52 }
 0x2c1   :  { %1716 = vmatpush3.msk.msra.mxu0 %vm501_vm9, %v1821_v35 }
 0x2c2   :  { %1717 = vmatprep.subr.mxu0 %v1822_v52 }
 0x2c3   :  { %1718 = vmatpush3.msk.msra.mxu0 %vm500_vm12, %v1821_v35 }
 0x2c4   :  { %1719 = vmatprep.subr.mxu0 %v1822_v52 }
 0x2c5   :  { %1720 = vmatpush3.msk.msra.mxu0 %vm499_vm2, %v1821_v35 }
 0x2c6   :  { %1722 = vmatmul.mubr.f32.vlgmr.msra.gmra.mxu0 %v2187_v16 }
 0x33a   :  { %v638_v27 = vpop.f32.mrf.mxu1 }
 0x33c   :  { %v1548_v29 = vpop.f32.mrf.mxu1 }
 0x342   :  { %v789_v28 = vpop.f32.mrf.mxu0 }
 0x343   :  { %v790_v38 = vadd.f32 %v789_v28, %v638_v27 }
 0x344   :  { %v1583_v30 = vpop.f32.mrf.mxu0 }
 0x35a   :  { %v893_v31 = vpop.f32.mrf.mxu1 }
 0x35b   :  { %v894_v39 = vadd.f32 %v893_v31, %v790_v38 }
 0x35c   :  { %v1618_v32 = vpop.f32.mrf.mxu1 }
 0x364   :  { %v982_v33 = vpop.f32.mrf.mxu0 }
 0x365   :  { %v983_v52 = vadd.f32 %v982_v33, %v894_v39 }
 0x366   :  { %v1653_v36 = vpop.f32.mrf.mxu0 }
 0x37c   :  { %v1101_v37 = vpop.f32.mrf.mxu1 }
 0x37d   :  { %v1102_v41 = vadd.f32 %v1101_v37, %v983_v52 }
 0x37e   :  { %v1688_v25 = vpop.f32.mrf.mxu1 }
 0x386   :  { %v1188_v26 = vpop.f32.mrf.mxu0 }
 0x387   :  { %v1189_v35 = vadd.f32 %v1188_v26, %v1102_v41 }
 0x388   :  { %v1723_v40 = vpop.f32.mrf.mxu0 }
 0x389   :  { %1192 = vst [vmem:[#allocation10] sm:$0x1] %v1189_v35  ;;  %v1724_v44 = vtrunc.f32 %v1189_v35 }
 0x38a   :  { %1781 = shalt.err (!%p1778_p0)
}
 0x38b   :  { %1204 = dma.vmem_to_hbm [thread:$0]  %s1202_s21, 16, %s2613_s6, [#allocation6]   ;;  %v1725_v45 = vcvt.f32.s32 %v1724_v44 }
 0x38c   :  { %s1790_s28 = scalar_lea.vmem %s1212_s23, 16  ;;  %s1794_s29 = scalar_lea.vmem %s1212_s23, 32 }
 0x38d   :  { %1194 = vst [vmem:[#allocation11 - $0x1] sm:$0x2] %v1725_v45  ;;  %p1791_p1 = scmp.ne.s32.totalorder %s1212_s23, %s1790_s28  ;;  %p1795_p2 = scmp.lt.s32.totalorder %s1212_s23, %s1212_s23 }
 0x38e   :  { %p1796_p3 = scmp.lt.s32.totalorder %s1794_s29, %s1790_s28 }
 0x390   :  { %p1797_p4 = por %p1796_p3, %p1795_p2 }
 0x392   :  { %p1798_p5 = pnand %p1797_p4, %p1791_p1 }
 0x394   :  { %1801 = shalt.err (!%p1798_p5)
}
 0x395   :  { %1214 = dma.vmem_to_hbm [thread:$0]  %s1212_s23, 16, %s2614_s7, [#allocation12]  }
 0x396   :  { %1814 = dma.done.wait [#allocation6], 16  }
 0x397   :  { %1815 = vsyncadd [#allocation6], 4294967280 }
 0x398   :  { %1816 = dma.done.wait [#allocation12], 16  }
 0x399   :  { %1817 = vsyncadd [#allocation12], 4294967280 }
 0x39a   :  { %1221 = vsyncpa [#allocation6], 1 }
 0x39b   :  { %1222 = vsyncpa [#allocation12], 1 }
 0x39c   :  { %1223 = vsyncpa [#allocation7], 1 }
 0x39d   :  { %1224 = vsyncpa [#allocation9], 1 }

</bundles_post_ra>
